<compile_context>
chip_gen: v7x
topology: tpu7x:2x2x1
jax: 0.10.0
libtpu: 0.0.40
codegen_flags: <defaults>
</compile_context>

<pallas_src>
import jax
import jax.numpy as jnp
from jax.experimental import pallas as pl
from jax.experimental.pallas import tpu as pltpu


def _round_up(x, m):
    return ((x + m - 1) // m) * m


def _cdiv(a, b):
    return -(-a // b)


def _choose_batch_tiling(batch, max_tile, min_tiles):
    """Pick a sublane-aligned batch tile. Few steps (0.35us/step overhead), but keep
    >= min_tiles evenly-splittable steps when the batch allows (v7x megacore)."""
    b8 = _round_up(max(int(batch), 1), 8)
    bt = min(_round_up(int(max_tile), 8), b8)
    n_tiles = max(_cdiv(b8, bt), min_tiles if b8 > 8 * min_tiles else 1)
    bt = _round_up(_cdiv(b8, n_tiles), 8)
    b_pad = _round_up(b8, bt)
    return bt, b_pad


def _block_diag(w):
    """[N, din, dout] -> block-diagonal [N*din, N*dout]."""
    n, din, dout = w.shape
    eye = jnp.eye(n, dtype=w.dtype)
    bd = eye[:, None, :, None] * w[:, :, None, :]        # [n, din, n, dout]
    return bd.reshape(n * din, n * dout)


# ----------------------------------------------------------------------------- kernels
def _mlp_kernel(x_ref,                   # [B_TILE, state_dim]              f32
                w1_ref, b1_ref,          # [state_dim, H1], [1, H1]
                w2_ref, b2_ref,          # [H1, H2],        [1, H2]
                w3_ref, b3_ref,          # [H2, OUT_PAD],   [1, OUT_PAD]    (lane-dense)
                o_ref):                  # [B_TILE, OUT_PAD]                f32
    wdt = w1_ref.dtype  # bf16 (MXU-native) or f32 (use_bf16=False, recommended on v5e)
    x = x_ref[...].astype(wdt)
    h = jnp.dot(x, w1_ref[...], preferred_element_type=jnp.float32) + b1_ref[...]
    h = jnp.maximum(h, 0.0)
    h = jnp.dot(h.astype(wdt), w2_ref[...], preferred_element_type=jnp.float32) + b2_ref[...]
    h = jnp.maximum(h, 0.0)
    mu = jnp.dot(h.astype(wdt), w3_ref[...], preferred_element_type=jnp.float32) + b3_ref[...]
    o_ref[...] = mu.astype(o_ref.dtype)


def _mlp_kernel_with_ids(ids_ref, *refs):
    # ids_ref (scalar prefetch, SMEM) is only consumed by the per-agent index_maps.
    del ids_ref
    _mlp_kernel(*refs)


# ------------------------------------------------------------------------ param prep
def init_params(key, state_dim, action_dim, hidden_dims, num_agents):
    """Deterministic synthetic parameters (shapes match the PyTorch module)."""
    k = jax.random.split(key, 7)
    h0, h1 = hidden_dims
    scale = 0.1
    return {
        # weights stored [num_agents, in, out] (transpose of PyTorch's [out, in])
        "w1": scale * jax.random.normal(k[0], (num_agents, state_dim, h0), jnp.float32),
        "b1": scale * jax.random.normal(k[1], (num_agents, 1, h0), jnp.float32),
        "w2": scale * jax.random.normal(k[2], (num_agents, h0, h1), jnp.float32),
        "b2": scale * jax.random.normal(k[3], (num_agents, 1, h1), jnp.float32),
        "w3": scale * jax.random.normal(k[4], (num_agents, h1, action_dim), jnp.float32),
        "b3": scale * jax.random.normal(k[5], (num_agents, 1, action_dim), jnp.float32),
        # nn.Parameter(torch.zeros(num_agents, action_dim)) -- perturbed so exp() is non-trivial
        "log_std": 0.1 * jax.random.normal(k[6], (num_agents, action_dim), jnp.float32),
    }


def prepare_params(params, *, use_bf16=True, fuse_threshold=1024):
    """One-time weight preprocessing (cast / pad / block-diagonal pack). Do NOT call
    per forward — that was a measured wall-clock sink."""
    w1, b1, w2, b2, w3, b3, log_std = (
        params["w1"], params["b1"], params["w2"], params["b2"],
        params["w3"], params["b3"], params["log_std"])
    num_agents, state_dim, h0 = w1.shape
    h1 = w2.shape[2]
    action_dim = w3.shape[2]
    wdt = jnp.bfloat16 if use_bf16 else jnp.float32

    prep = {
        "num_agents": num_agents, "state_dim": state_dim,
        "h0": h0, "h1": h1, "action_dim": action_dim,
        "std": jnp.exp(log_std),                      # [num_agents, action_dim]
        "log_std": log_std,
    }
    fused = (num_agents * h0 <= fuse_threshold) and (num_agents * h1 <= fuse_threshold)
    prep["fused"] = fused

    if fused:
        H1, H2 = num_agents * h0, num_agents * h1
        out_cols = num_agents * action_dim
        out_pad = _round_up(out_cols, 128)
        # Layer 1: input is shared -> concatenate heads along the output axis.
        W1 = jnp.transpose(w1, (1, 0, 2)).reshape(state_dim, H1)
        B1 = b1.reshape(1, H1)
        # Layers 2/3: block-diagonal so agent a's hidden only feeds agent a's outputs.
        W2 = _block_diag(w2)                                        # [H1, H2]
        B2 = b2.reshape(1, H2)
        W3 = jnp.pad(_block_diag(w3), ((0, 0), (0, out_pad - out_cols)))
        B3 = jnp.pad(b3.reshape(1, out_cols), ((0, 0), (0, out_pad - out_cols)))
        prep.update(
            fw1=W1.astype(wdt), fb1=B1.astype(jnp.float32),
            fw2=W2.astype(wdt), fb2=B2.astype(jnp.float32),
            fw3=W3.astype(wdt), fb3=B3.astype(jnp.float32),
            H1=H1, H2=H2, out_pad=out_pad)
    else:
        n_pad = _round_up(action_dim, 128)
        w3p = jnp.pad(w3, ((0, 0), (0, 0), (0, n_pad - action_dim)))
        b3p = jnp.pad(b3, ((0, 0), (0, 0), (0, n_pad - action_dim)))
        prep.update(
            w1=w1.astype(wdt), b1=b1.astype(jnp.float32),
            w2=w2.astype(wdt), b2=b2.astype(jnp.float32),
            w3=w3p.astype(wdt), b3=b3p.astype(jnp.float32),
            n_pad=n_pad)
    return prep


# ------------------------------------------------------------------------- forwards
def _forward_fused(prep, states, b_tile):
    """All agents at once via block-diagonal weights; grid over batch only."""
    B, state_dim = states.shape
    H1, H2, out_pad = prep["H1"], prep["H2"], prep["out_pad"]
    bt, b_pad = _choose_batch_tiling(B, b_tile, min_tiles=2)   # >=2 tiles for v7x megacore
    if b_pad != B:
        states = jnp.pad(states, ((0, b_pad - B), (0, 0)))

    out = pl.pallas_call(
        _mlp_kernel,
        out_shape=jax.ShapeDtypeStruct((b_pad, out_pad), jnp.float32),
        grid_spec=pltpu.PrefetchScalarGridSpec(
            num_scalar_prefetch=0,
            grid=(b_pad // bt,),
            in_specs=[
                pl.BlockSpec((bt, state_dim), lambda b: (b, 0)),   # states
                pl.BlockSpec((state_dim, H1), lambda b: (0, 0)),   # W1_all
                pl.BlockSpec((1, H1), lambda b: (0, 0)),           # b1_all
                pl.BlockSpec((H1, H2), lambda b: (0, 0)),          # W2 block-diag
                pl.BlockSpec((1, H2), lambda b: (0, 0)),           # b2_all
                pl.BlockSpec((H2, out_pad), lambda b: (0, 0)),     # W3 block-diag (lane-padded)
                pl.BlockSpec((1, out_pad), lambda b: (0, 0)),      # b3_all (lane-padded)
            ],
            out_specs=pl.BlockSpec((bt, out_pad), lambda b: (b, 0)),
        ),
        compiler_params=pltpu.CompilerParams(dimension_semantics=("parallel",)),
    )(states, prep["fw1"], prep["fb1"], prep["fw2"], prep["fb2"], prep["fw3"], prep["fb3"])
    return out, B  # [b_pad, out_pad]; agent a occupies cols [a*action_dim, (a+1)*action_dim)


def _forward_per_agent(prep, states, agent_ids, b_tile):
    """Per-agent head selection via scalar prefetch (used when fusion would be too big)."""
    A = agent_ids.shape[0]
    B, state_dim = states.shape
    h0, h1, n_pad = prep["h0"], prep["h1"], prep["n_pad"]
    # Batch stays innermost so per-agent weight blocks remain resident across batch tiles.
    min_tiles = 1 if A >= 2 else 2
    bt, b_pad = _choose_batch_tiling(B, b_tile, min_tiles)
    if b_pad != B:
        states = jnp.pad(states, ((0, b_pad - B), (0, 0)))

    sq = pl.Squeezed()

    def wmap(a, b, ids):   # per-agent weight/bias block, agent dim squeezed
        return (ids[a], 0, 0)

    def xmap(a, b, ids):   # batch tile, shared across agents
        return (b, 0)

    def omap(a, b, ids):   # output slab indexed by selection position
        return (a, b, 0)

    mu_padded = pl.pallas_call(
        _mlp_kernel_with_ids,
        out_shape=jax.ShapeDtypeStruct((A, b_pad, n_pad), jnp.float32),
        grid_spec=pltpu.PrefetchScalarGridSpec(
            num_scalar_prefetch=1,
            grid=(A, b_pad // bt),
            in_specs=[
                pl.BlockSpec((bt, state_dim), xmap),        # states
                pl.BlockSpec((sq, state_dim, h0), wmap),    # w1
                pl.BlockSpec((sq, 1, h0), wmap),            # b1
                pl.BlockSpec((sq, h0, h1), wmap),           # w2
                pl.BlockSpec((sq, 1, h1), wmap),            # b2
                pl.BlockSpec((sq, h1, n_pad), wmap),        # w3 (lane-padded)
                pl.BlockSpec((sq, 1, n_pad), wmap),         # b3 (lane-padded)
            ],
            out_specs=pl.BlockSpec((sq, bt, n_pad), omap),
        ),
        compiler_params=pltpu.CompilerParams(
            dimension_semantics=("parallel", "parallel")),
    )(agent_ids, states, prep["w1"], prep["b1"], prep["w2"], prep["b2"],
      prep["w3"], prep["b3"])
    return mu_padded  # [A, b_pad, n_pad]


def policy_forward_agents(prep, states, agent_ids, *, b_tile=2048):
    """Batched multi-agent forward.

    states:    [B, state_dim] float32
    agent_ids: [A] int
    returns (mu [A, B, action_dim] f32, std [A, action_dim] f32).
    std is constant over the batch (== exp(log_std)[agent]); broadcast lazily downstream.
    Intended to be jitted together with its consumer so the tiny post-kernel
    slice/gather fuses instead of becoming a standalone copy kernel.
    """
    n_agents, ad = prep["num_agents"], prep["action_dim"]
    agent_ids = jnp.clip(jnp.asarray(agent_ids, jnp.int32).reshape(-1), 0, n_agents - 1)

    if prep["fused"]:
        out, B = _forward_fused(prep, states, b_tile)
        mu_all = out[:B, : n_agents * ad].reshape(B, n_agents, ad)
        mu = jnp.transpose(mu_all, (1, 0, 2))[agent_ids]        # [A, B, action_dim]
    else:
        B = states.shape[0]
        mu_padded = _forward_per_agent(prep, states, agent_ids, b_tile)
        mu = mu_padded[:, :B, :ad]

    std = prep["std"][agent_ids]                                 # [A, action_dim]
    return mu, std


def policy_forward(prep, state, agent_id, *, b_tile=2048):
    """Single-agent forward matching PolicyNetwork.forward (continuous case)."""
    if state.ndim == 1:
        state = state[None, :]                                   # state.unsqueeze(0)
    mu, std = policy_forward_agents(
        prep, state, jnp.asarray([agent_id], jnp.int32), b_tile=b_tile)
    mu = mu[0]
    std = jnp.broadcast_to(std[0][None, :], mu.shape)            # log_std.exp().expand_as(mu)
    return mu, std


def reference_forward(params, state, agent_id):
    """Pure-JAX f32 reference (matches the PyTorch forward)."""
    if state.ndim == 1:
        state = state[None, :]
    h = jnp.maximum(state @ params["w1"][agent_id] + params["b1"][agent_id], 0.0)
    h = jnp.maximum(h @ params["w2"][agent_id] + params["b2"][agent_id], 0.0)
    mu = h @ params["w3"][agent_id] + params["b3"][agent_id]
    std = jnp.broadcast_to(jnp.exp(params["log_std"][agent_id]), mu.shape)
    return mu, std


if __name__ == "__main__":
    # TODO(synk): discrete (Categorical logits) branch and get_action_dist /
    # sample_action / evaluate_actions (Normal/Categorical sampling, log_prob, entropy)
    # are distribution utilities layered on top of this forward and stay in plain JAX.
    state_dim, action_dim = 8, 4
    hidden_dims = [32, 32]
    num_agents = 4

    key = jax.random.PRNGKey(0)
    pkey, skey1, skey2 = jax.random.split(key, 3)
    params = init_params(pkey, state_dim, action_dim, hidden_dims, num_agents)

    # 1) Fused block-diagonal path, exact f32, single-agent tiny batch (module semantics).
    prep_f32 = prepare_params(params, use_bf16=False)
    assert prep_f32["fused"]
    small_states = jax.random.normal(skey1, (2, state_dim), jnp.float32)
    mu, std = policy_forward(prep_f32, small_states, agent_id=1)
    jax.block_until_ready((mu, std))
    mu_ref, std_ref = reference_forward(params, small_states, 1)
    assert mu.shape == (2, action_dim) and std.shape == (2, action_dim)
    assert jnp.allclose(mu, mu_ref, atol=1e-5, rtol=1e-5)
    assert jnp.allclose(std, std_ref, atol=1e-6, rtol=1e-6)

    # 2) Fused path, bf16 MXU, batched multi-agent; jit so the post-kernel gather fuses.
    prep_bf16 = prepare_params(params, use_bf16=True)
    big_states = jax.random.normal(skey2, (256, state_dim), jnp.float32)
    agent_ids = jnp.arange(num_agents, dtype=jnp.int32)
    fwd = jax.jit(lambda s, ids: policy_forward_agents(prep_bf16, s, ids))
    mu_all, std_all = fwd(big_states, agent_ids)
    jax.block_until_ready((mu_all, std_all))
    assert mu_all.shape == (num_agents, 256, action_dim)
    assert std_all.shape == (num_agents, action_dim)
    for a in range(num_agents):
        mr, sr = reference_forward(params, big_states, a)
        assert jnp.allclose(mu_all[a], mr, atol=2e-2, rtol=2e-2)
        assert jnp.allclose(std_all[a], sr[0], atol=1e-6, rtol=1e-6)

    # 3) Per-agent scalar-prefetch path (used when num_agents*hidden is too large to
    #    fuse block-diagonally), exact f32.
    prep_pa = prepare_params(params, use_bf16=False, fuse_threshold=0)
    assert not prep_pa["fused"]
    mu_pa, std_pa = policy_forward_agents(prep_pa, big_states, agent_ids)
    jax.block_until_ready((mu_pa, std_pa))
    assert mu_pa.shape == (num_agents, 256, action_dim)
    for a in range(num_agents):
        mr, _ = reference_forward(params, big_states, a)
        assert jnp.allclose(mu_pa[a], mr, atol=1e-5, rtol=1e-5)

    print("KERNEL_OK")
</pallas_src>

<mosaic_0001>
module attributes {stable_mosaic.version = 11 : i64} {
  func.func @_mlp_kernel(%arg0: i32, %arg1: memref<8x8xf32, #tpu.memory_space<vmem>>, %arg2: memref<8x128xf32, #tpu.memory_space<vmem>>, %arg3: memref<1x128xf32, #tpu.memory_space<vmem>>, %arg4: memref<128x128xf32, #tpu.memory_space<vmem>>, %arg5: memref<1x128xf32, #tpu.memory_space<vmem>>, %arg6: memref<128x128xf32, #tpu.memory_space<vmem>>, %arg7: memref<1x128xf32, #tpu.memory_space<vmem>>, %arg8: memref<8x128xf32, #tpu.memory_space<vmem>>) attributes {dimension_semantics = [#tpu.dimension_semantics<parallel>], iteration_bounds = array<i64: 1>, scalar_prefetch = 0 : i64, scratch_operands = 0 : i64, tpu.core_type = #tpu.core_type<tc>, window_params = [{transform_indices = @transform_0, window_bounds = array<i64: 8, 8>}, {pipeline_mode = #tpu.pipeline_mode<synchronous>, transform_indices = @transform_1, window_bounds = array<i64: 8, 128>}, {pipeline_mode = #tpu.pipeline_mode<synchronous>, transform_indices = @transform_2, window_bounds = array<i64: 1, 128>}, {pipeline_mode = #tpu.pipeline_mode<synchronous>, transform_indices = @transform_3, window_bounds = array<i64: 128, 128>}, {pipeline_mode = #tpu.pipeline_mode<synchronous>, transform_indices = @transform_4, window_bounds = array<i64: 1, 128>}, {pipeline_mode = #tpu.pipeline_mode<synchronous>, transform_indices = @transform_5, window_bounds = array<i64: 128, 128>}, {pipeline_mode = #tpu.pipeline_mode<synchronous>, transform_indices = @transform_6, window_bounds = array<i64: 1, 128>}, {transform_indices = @transform_7, window_bounds = array<i64: 8, 128>}]} {
    %c0 = arith.constant 0 : index
    %c0_0 = arith.constant 0 : index
    %0 = vector.load %arg1[%c0, %c0_0] : memref<8x8xf32, #tpu.memory_space<vmem>>, vector<8x8xf32>
    %c0_1 = arith.constant 0 : index
    %c0_2 = arith.constant 0 : index
    %1 = vector.load %arg2[%c0_1, %c0_2] : memref<8x128xf32, #tpu.memory_space<vmem>>, vector<8x128xf32>
    %cst = arith.constant dense<0.000000e+00> : vector<8x128xf32>
    %2 = tpu.matmul %0, %1, %cst {dimension_numbers = #tpu.dot_dimension_numbers<[1], [0], [0], [1], [0, 0, 1, 1], [], []>} : vector<8x8xf32>, vector<8x128xf32>, vector<8x128xf32> -> vector<8x128xf32>
    %c0_3 = arith.constant 0 : index
    %c0_4 = arith.constant 0 : index
    %3 = vector.load %arg3[%c0_3, %c0_4] : memref<1x128xf32, #tpu.memory_space<vmem>>, vector<1x128xf32>
    %4 = vector.broadcast %3 : vector<1x128xf32> to vector<8x128xf32>
    %5 = arith.addf %2, %4 : vector<8x128xf32>
    %cst_5 = arith.constant 0.000000e+00 : f32
    %6 = vector.broadcast %cst_5 : f32 to vector<8x128xf32>
    %7 = arith.maximumf %5, %6 : vector<8x128xf32>
    %c0_6 = arith.constant 0 : index
    %c0_7 = arith.constant 0 : index
    %8 = vector.load %arg4[%c0_6, %c0_7] : memref<128x128xf32, #tpu.memory_space<vmem>>, vector<128x128xf32>
    %cst_8 = arith.constant dense<0.000000e+00> : vector<8x128xf32>
    %9 = tpu.matmul %7, %8, %cst_8 {dimension_numbers = #tpu.dot_dimension_numbers<[1], [0], [0], [1], [0, 0, 1, 1], [], []>} : vector<8x128xf32>, vector<128x128xf32>, vector<8x128xf32> -> vector<8x128xf32>
    %c0_9 = arith.constant 0 : index
    %c0_10 = arith.constant 0 : index
    %10 = vector.load %arg5[%c0_9, %c0_10] : memref<1x128xf32, #tpu.memory_space<vmem>>, vector<1x128xf32>
    %11 = vector.broadcast %10 : vector<1x128xf32> to vector<8x128xf32>
    %12 = arith.addf %9, %11 : vector<8x128xf32>
    %cst_11 = arith.constant 0.000000e+00 : f32
    %13 = vector.broadcast %cst_11 : f32 to vector<8x128xf32>
    %14 = arith.maximumf %12, %13 : vector<8x128xf32>
    %c0_12 = arith.constant 0 : index
    %c0_13 = arith.constant 0 : index
    %15 = vector.load %arg6[%c0_12, %c0_13] : memref<128x128xf32, #tpu.memory_space<vmem>>, vector<128x128xf32>
    %cst_14 = arith.constant dense<0.000000e+00> : vector<8x128xf32>
    %16 = tpu.matmul %14, %15, %cst_14 {dimension_numbers = #tpu.dot_dimension_numbers<[1], [0], [0], [1], [0, 0, 1, 1], [], []>} : vector<8x128xf32>, vector<128x128xf32>, vector<8x128xf32> -> vector<8x128xf32>
    %c0_15 = arith.constant 0 : index
    %c0_16 = arith.constant 0 : index
    %17 = vector.load %arg7[%c0_15, %c0_16] : memref<1x128xf32, #tpu.memory_space<vmem>>, vector<1x128xf32>
    %18 = vector.broadcast %17 : vector<1x128xf32> to vector<8x128xf32>
    %19 = arith.addf %16, %18 : vector<8x128xf32>
    %c0_17 = arith.constant 0 : index
    %c0_18 = arith.constant 0 : index
    %20 = vector.load %arg8[%c0_17, %c0_18] : memref<8x128xf32, #tpu.memory_space<vmem>>, vector<8x128xf32>
    tpu.vector_store %arg8[%c0_17, %c0_18], %19 {strides = array<i32>} : memref<8x128xf32, #tpu.memory_space<vmem>>, vector<8x128xf32>,
    return
  }
  func.func @transform_0(%arg0: i32) -> (i32, i32) {
    %c0_i32 = arith.constant 0 : i32
    %c0_i32_0 = arith.constant 0 : i32
    return %arg0, %c0_i32 : i32, i32
  }
  func.func @transform_1(%arg0: i32) -> (i32, i32) {
    %c0_i32 = arith.constant 0 : i32
    %c0_i32_0 = arith.constant 0 : i32
    %c0_i32_1 = arith.constant 0 : i32
    return %c0_i32, %c0_i32_0 : i32, i32
  }
  func.func @transform_2(%arg0: i32) -> (i32, i32) {
    %c0_i32 = arith.constant 0 : i32
    %c0_i32_0 = arith.constant 0 : i32
    %c0_i32_1 = arith.constant 0 : i32
    return %c0_i32, %c0_i32_0 : i32, i32
  }
  func.func @transform_3(%arg0: i32) -> (i32, i32) {
    %c0_i32 = arith.constant 0 : i32
    %c0_i32_0 = arith.constant 0 : i32
    %c0_i32_1 = arith.constant 0 : i32
    return %c0_i32, %c0_i32_0 : i32, i32
  }
  func.func @transform_4(%arg0: i32) -> (i32, i32) {
    %c0_i32 = arith.constant 0 : i32
    %c0_i32_0 = arith.constant 0 : i32
    %c0_i32_1 = arith.constant 0 : i32
    return %c0_i32, %c0_i32_0 : i32, i32
  }
  func.func @transform_5(%arg0: i32) -> (i32, i32) {
    %c0_i32 = arith.constant 0 : i32
    %c0_i32_0 = arith.constant 0 : i32
    %c0_i32_1 = arith.constant 0 : i32
    return %c0_i32, %c0_i32_0 : i32, i32
  }
  func.func @transform_6(%arg0: i32) -> (i32, i32) {
    %c0_i32 = arith.constant 0 : i32
    %c0_i32_0 = arith.constant 0 : i32
    %c0_i32_1 = arith.constant 0 : i32
    return %c0_i32, %c0_i32_0 : i32, i32
  }
  func.func @transform_7(%arg0: i32) -> (i32, i32) {
    %c0_i32 = arith.constant 0 : i32
    %c0_i32_0 = arith.constant 0 : i32
    return %arg0, %c0_i32 : i32, i32
  }
}

</mosaic_0001>

<bundles_post_ra>
// kernel: tpu_custom_call.1
= control target key start
LH: loop header
LB: loop body
LE: loop exit
PB: predicated region body
PF: predicated region fallthrough
CT: control target
= control target key end

     0   :  { %12 = vsyncpa [#allocation3], 0  ;;  %s796_s0 = inlined_call_operand.hbm [shape: f32[8,8], index: 0, kind: input, shape index: {}]   ;;  %s797_s1 = inlined_call_operand.hbm [shape: f32[8,128], index: 1, kind: input, shape index: {}]   ;;  %s798_s2 = inlined_call_operand.vmem [shape: f32[1,128], index: 2, kind: input, shape index: {}]   ;;  %s799_s3 = inlined_call_operand.hbm [shape: f32[128,128], index: 3, kind: input, shape index: {}]   ;;  %s800_s4 = inlined_call_operand.vmem [shape: f32[1,128], index: 4, kind: input, shape index: {}]   ;;  %s801_s5 = inlined_call_operand.hbm [shape: f32[128,128], index: 5, kind: input, shape index: {}]   ;;  %s802_s6 = inlined_call_operand.vmem [shape: f32[1,128], index: 6, kind: input, shape index: {}]   ;;  %s803_s7 = inlined_call_operand.hbm [shape: f32[8,128], index: 7, kind: output, shape index: {}]  }
   0x1   :  { %13 = vsyncpa [#allocation6], 0 }
   0x2   :  { %14 = vsyncpa [#allocation9], 0 }
   0x3   :  { %15 = vsyncpa [#allocation4], 0  ;;  %s658_s24 = smov [#allocation5]   ;;  %s659_s26 = smov [#allocation2]  }
   0x4   :  { %s32_s25 = sshll.u32 %s658_s24, 4  ;;  %s22_s27 = sshll.u32 %s659_s26, 4  ;;  %s33_s25 = int_to_ptr.vmem [resolvable:$true] %s32_s25  ;;  %s23_s27 = int_to_ptr.vmem [resolvable:$true] %s22_s27 }
   0x5   :  { %s540_s30 = scalar_lea.hbm %s797_s1, 128 }
   0x6   :  { %p541_p0 = scmp.ne.s32.totalorder %s797_s1, %s540_s30  ;;  %p544_p1 = scmp.lt.u32.totalorder %s540_s30, %s797_s1 }
   0x8   :  { %p546_p2 = pnand %p544_p1, %p541_p0 }
   0xa   :  { %549 = shalt.err (!%p546_p2)
}
   0xb   :  { %s550_s12 = scalar_lea.vmem %s33_s25, 128  ;;  %p555_p4 = scmp.lt.s32.totalorder %s33_s25, %s33_s25 }
   0xc   :  { %p551_p3 = scmp.ne.s32.totalorder %s33_s25, %s550_s12  ;;  %p556_p5 = scmp.lt.s32.totalorder %s550_s12, %s550_s12 }
   0xe   :  { %p557_p6 = por %p556_p5, %p555_p4 }
  0x10   :  { %p558_p7 = pnand %p557_p6, %p551_p3 }
  0x12   :  { %561 = shalt.err (!%p558_p7)
}
  0x13   :  { %35 = dma.hbm_to_vmem [thread:$0]  %s797_s1, 128, %s33_s25, [#allocation6]  }
  0x14   :  { %s562_s17 = scalar_lea.hbm %s796_s0, 128 }
  0x15   :  { %p563_p8 = scmp.ne.s32.totalorder %s796_s0, %s562_s17  ;;  %p566_p9 = scmp.lt.u32.totalorder %s562_s17, %s796_s0 }
  0x17   :  { %p568_p10 = pnand %p566_p9, %p563_p8 }
  0x19   :  { %571 = shalt.err (!%p568_p10)
}
  0x1a   :  { %s572_s22 = scalar_lea.vmem %s23_s27, 128  ;;  %p577_p12 = scmp.lt.s32.totalorder %s23_s27, %s23_s27 }
  0x1b   :  { %p573_p11 = scmp.ne.s32.totalorder %s23_s27, %s572_s22  ;;  %p578_p13 = scmp.lt.s32.totalorder %s572_s22, %s572_s22 }
  0x1d   :  { %p579_p0 = por %p578_p13, %p577_p12 }
  0x1f   :  { %p580_p1 = pnand %p579_p0, %p573_p11 }
  0x21   :  { %583 = shalt.err (!%p580_p1)
}
  0x22   :  { %25 = dma.hbm_to_vmem [thread:$0]  %s796_s0, 128, %s23_s27, [#allocation3]  }
  0x23   :  { %s660_s24 = smov [#allocation7]   ;;  %s584_s29 = scalar_lea.hbm %s799_s3, 2048 }
  0x24   :  { %s43_s25 = sshll.u32 %s660_s24, 4  ;;  %p585_p2 = scmp.ne.s32.totalorder %s799_s3, %s584_s29  ;;  %s44_s25 = int_to_ptr.vmem [resolvable:$true] %s43_s25 }
  0x25   :  { %p588_p3 = scmp.lt.u32.totalorder %s584_s29, %s799_s3 }
  0x27   :  { %p590_p4 = pnand %p588_p3, %p585_p2 }
  0x29   :  { %593 = shalt.err (!%p590_p4)
}
  0x2a   :  { %s594_s11 = scalar_lea.vmem %s44_s25, 2048  ;;  %p599_p6 = scmp.lt.s32.totalorder %s44_s25, %s44_s25 }
  0x2b   :  { %p595_p5 = scmp.ne.s32.totalorder %s44_s25, %s594_s11  ;;  %p600_p7 = scmp.lt.s32.totalorder %s594_s11, %s594_s11 }
  0x2d   :  { %p601_p8 = por %p600_p7, %p599_p6 }
  0x2f   :  { %p602_p9 = pnand %p601_p8, %p595_p5 }
  0x31   :  { %605 = shalt.err (!%p602_p9)
}
  0x32   :  { %s661_s0 = smov 128   ;;  %s662_s27 = smov 8  }
  0x33   :  { %49 = dma.hbm_to_vmem [thread:$0]  %s799_s3, 2048, %s44_s25, [#allocation6], %s661_s0, %s661_s0, %s662_s27  }
  0x34   :  { %s663_s14 = smov [#allocation8]   ;;  %s606_s18 = scalar_lea.hbm %s801_s5, 2048 }
  0x35   :  { %s57_s15 = sshll.u32 %s663_s14, 4  ;;  %p607_p10 = scmp.ne.s32.totalorder %s801_s5, %s606_s18  ;;  %s58_s15 = int_to_ptr.vmem [resolvable:$true] %s57_s15 }
  0x36   :  { %p610_p11 = scmp.lt.u32.totalorder %s606_s18, %s801_s5 }
  0x38   :  { %p612_p12 = pnand %p610_p11, %p607_p10 }
  0x3a   :  { %615 = shalt.err (!%p612_p12)
}
  0x3b   :  { %s616_s1 = scalar_lea.vmem %s58_s15, 2048  ;;  %p621_p0 = scmp.lt.s32.totalorder %s58_s15, %s58_s15 }
  0x3c   :  { %p617_p13 = scmp.ne.s32.totalorder %s58_s15, %s616_s1  ;;  %p622_p1 = scmp.lt.s32.totalorder %s616_s1, %s616_s1 }
  0x3e   :  { %p623_p2 = por %p622_p1, %p621_p0 }
  0x40   :  { %p624_p3 = pnand %p623_p2, %p617_p13 }
  0x42   :  { %627 = shalt.err (!%p624_p3)
}
  0x43   :  { %63 = dma.hbm_to_vmem [thread:$0]  %s801_s5, 2048, %s58_s15, [#allocation9], %s661_s0, %s661_s0, %s662_s27  }
  0x44   :  { %650 = dma.done.wait [#allocation3], 128  }
  0x45   :  { %651 = vsyncadd [#allocation3], 4294967168 }
  0x46   :  { %652 = dma.done.wait [#allocation6], 2176  }
  0x47   :  { %653 = vsyncadd [#allocation6], 4294965120 }
  0x48   :  { %654 = dma.done.wait [#allocation9], 2048  }
  0x49   :  { %655 = vsyncadd [#allocation9], 4294965248  ;;  %v664_v0 = vmov 0.0   ;;  %vm665_vm0 = vmmov 0   ;;  %v666_v1 = vmov 0.0|0.0   ;;  %vm87_vm1 = vcmask 64512  }
  0x4a   :  { %407 = vmatprep.subr.mxu0 %v664_v0  ;;  %409 = vmatprep.mubr.msk.f32.mxu0 %vm665_vm0, %v664_v0  ;;  %v79_v2 = vld [vmem:[#allocation5] sm:$0xff]  ;;  %v78_v3 = vld [vmem:[#allocation2] sm:$0xff]  ;;  %v162_v4 = vld [vmem:[#allocation7] sm:$0xff]  ;;  %s667_s29 = smov [#allocation10]  }
  0x4b   :  { %482 = vmatprep.subr.bf16.mxu1 %v666_v1  ;;  %444 = vmatprep.mubr.msk.f32.mxu1 %vm665_vm0, %v664_v0  ;;  %v163_v5 = vld [vmem:[#allocation7 + $0x8] sm:$0xff]  ;;  %v164_v6 = vld [vmem:[#allocation7 + $0x10] sm:$0xff]  ;;  %v165_v7 = vld [vmem:[#allocation7 + $0x18] sm:$0xff]  ;;  %s356_s30 = sshll.u32 %s667_s29, 4  ;;  %s357_s30 = int_to_ptr.vmem [resolvable:$true] %s356_s30 }
  0x4c   :  { %408 = vmatpush3.msra.mxu0 %v79_v2  ;;  %v483_v8 = vpack.c.bf16 %v163_v5, %v162_v4  ;;  %v486_v9 = vpack.c.bf16 %v165_v7, %v164_v6  ;;  %v166_v10 = vld [vmem:[#allocation7 + $0x20] sm:$0xff]  ;;  %v167_v11 = vld [vmem:[#allocation7 + $0x28] sm:$0xff]  ;;  %v168_v13 = vld [vmem:[#allocation7 + $0x30] sm:$0xff]  ;;  %s628_s8 = scalar_lea.vmem %s357_s30, 128  ;;  %p633_p5 = scmp.lt.s32.totalorder %s357_s30, %s357_s30 }
  0x4d   :  { %410 = vmatmul.mubr.msk.f32.vlgmr.msra.gmra.mrb[0].mxu0 %vm87_vm1, %v78_v3  ;;  %506 = vmatprep.subr.bf16.mxu0 %v666_v1  ;;  %v489_v12 = vpack.c.bf16 %v167_v11, %v166_v10  ;;  %v169_v14 = vld [vmem:[#allocation7 + $0x38] sm:$0xff]  ;;  %v170_v16 = vld [vmem:[#allocation7 + $0x40] sm:$0xff]  ;;  %v171_v17 = vld [vmem:[#allocation7 + $0x48] sm:$0xff]  ;;  %p629_p4 = scmp.ne.s32.totalorder %s357_s30, %s628_s8  ;;  %p634_p6 = scmp.lt.s32.totalorder %s628_s8, %s628_s8 }
  0x4e   :  { %479 = vmatprep.mubr.msk.f32.mxu0 %vm665_vm0, %v664_v0  ;;  %484 = vmatpush3.bf16.msra.mxu1 %v483_v8  ;;  %v492_v15 = vpack.c.bf16 %v169_v14, %v168_v13  ;;  %v495_v18 = vpack.c.bf16 %v171_v17, %v170_v16  ;;  %v172_v19 = vld [vmem:[#allocation7 + $0x50] sm:$0xff]  ;;  %v173_v20 = vld [vmem:[#allocation7 + $0x58] sm:$0xff]  ;;  %v174_v22 = vld [vmem:[#allocation7 + $0x60] sm:$0xff] }
  0x4f   :  { %485 = vmatprep.subr.bf16.mxu1 %v666_v1  ;;  %v498_v21 = vpack.c.bf16 %v173_v20, %v172_v19  ;;  %v175_v23 = vld [vmem:[#allocation7 + $0x68] sm:$0xff]  ;;  %v176_v25 = vld [vmem:[#allocation7 + $0x70] sm:$0xff]  ;;  %v177_v26 = vld [vmem:[#allocation7 + $0x78] sm:$0xff]  ;;  %p635_p7 = por %p634_p6, %p633_p5 }
  0x50   :  { %v501_v24 = vpack.c.bf16 %v175_v23, %v174_v22  ;;  %v504_v27 = vpack.c.bf16 %v177_v26, %v176_v25  ;;  %v256_v28 = vld [vmem:[#allocation8] sm:$0xff]  ;;  %v257_v29 = vld [vmem:[#allocation8 + $0x8] sm:$0xff]  ;;  %v258_v30 = vld [vmem:[#allocation8 + $0x10] sm:$0xff] }
  0x51   :  { %v507_v31 = vpack.c.bf16 %v257_v29, %v256_v28  ;;  %v259_v32 = vld [vmem:[#allocation8 + $0x18] sm:$0xff]  ;;  %v260_v34 = vld [vmem:[#allocation8 + $0x20] sm:$0xff]  ;;  %v261_v35 = vld [vmem:[#allocation8 + $0x28] sm:$0xff]  ;;  %p636_p8 = pnand %p635_p7, %p629_p4 }
  0x52   :  { %487 = vmatpush3.bf16.msra.mxu1 %v486_v9  ;;  %v510_v33 = vpack.c.bf16 %v259_v32, %v258_v30  ;;  %v513_v36 = vpack.c.bf16 %v261_v35, %v260_v34  ;;  %v262_v37 = vld [vmem:[#allocation8 + $0x30] sm:$0xff]  ;;  %v263_v38 = vld [vmem:[#allocation8 + $0x38] sm:$0xff]  ;;  %v264_v40 = vld [vmem:[#allocation8 + $0x40] sm:$0xff] }
  0x53   :  { %488 = vmatprep.subr.bf16.mxu1 %v666_v1  ;;  %508 = vmatpush3.bf16.msra.mxu0 %v507_v31  ;;  %v516_v39 = vpack.c.bf16 %v263_v38, %v262_v37  ;;  %v265_v41 = vld [vmem:[#allocation8 + $0x48] sm:$0xff]  ;;  %v266_v43 = vld [vmem:[#allocation8 + $0x50] sm:$0xff]  ;;  %v267_v44 = vld [vmem:[#allocation8 + $0x58] sm:$0xff] }
  0x54   :  { %509 = vmatprep.subr.bf16.mxu0 %v666_v1  ;;  %v519_v42 = vpack.c.bf16 %v265_v41, %v264_v40  ;;  %v522_v45 = vpack.c.bf16 %v267_v44, %v266_v43  ;;  %v268_v46 = vld [vmem:[#allocation8 + $0x60] sm:$0xff]  ;;  %v269_v47 = vld [vmem:[#allocation8 + $0x68] sm:$0xff]  ;;  %v367_v49 = vld [vmem:[%s798_s2] ss:$0 sm:$0xff] }
  0x55   :  { %v525_v48 = vpack.c.bf16 %v269_v47, %v268_v46  ;;  %v270_v54 = vld [vmem:[#allocation8 + $0x70] sm:$0xff]  ;;  %v271_v55 = vld [vmem:[#allocation8 + $0x78] sm:$0xff] }
  0x56   :  { %490 = vmatpush3.bf16.msra.mxu1 %v489_v12  ;;  %v528_v56 = vpack.c.bf16 %v271_v55, %v270_v54  ;;  %v369_v57 = vld [vmem:[%s800_s4] ss:$0 sm:$0xff] }
  0x57   :  { %491 = vmatprep.subr.bf16.mxu1 %v666_v1  ;;  %511 = vmatpush3.bf16.msra.mxu0 %v510_v33  ;;  %v370_v62 = vld [vmem:[%s802_s6] ss:$0 sm:$0xff] }
  0x58   :  { %512 = vmatprep.subr.bf16.mxu0 %v666_v1 }
  0x5a   :  { %493 = vmatpush3.bf16.msra.mxu1 %v492_v15 }
  0x5b   :  { %494 = vmatprep.subr.bf16.mxu1 %v666_v1  ;;  %514 = vmatpush3.bf16.msra.mxu0 %v513_v36 }
  0x5c   :  { %515 = vmatprep.subr.bf16.mxu0 %v666_v1 }
  0x5e   :  { %496 = vmatpush3.bf16.msra.mxu1 %v495_v18 }
  0x5f   :  { %497 = vmatprep.subr.bf16.mxu1 %v666_v1  ;;  %517 = vmatpush3.bf16.msra.mxu0 %v516_v39 }
  0x60   :  { %518 = vmatprep.subr.bf16.mxu0 %v666_v1 }
  0x62   :  { %499 = vmatpush3.bf16.msra.mxu1 %v498_v21 }
  0x63   :  { %500 = vmatprep.subr.bf16.mxu1 %v666_v1  ;;  %520 = vmatpush3.bf16.msra.mxu0 %v519_v42 }
  0x64   :  { %521 = vmatprep.subr.bf16.mxu0 %v666_v1 }
  0x66   :  { %502 = vmatpush3.bf16.msra.mxu1 %v501_v24 }
  0x67   :  { %503 = vmatprep.subr.bf16.mxu1 %v666_v1  ;;  %523 = vmatpush3.bf16.msra.mxu0 %v522_v45 }
  0x68   :  { %524 = vmatprep.subr.bf16.mxu0 %v666_v1 }
  0x6a   :  { %505 = vmatpush3.bf16.msra.mxu1 %v504_v27 }
  0x6b   :  { %526 = vmatpush3.bf16.msra.mxu0 %v525_v48 }
  0x6c   :  { %527 = vmatprep.subr.bf16.mxu0 %v666_v1 }
  0x6f   :  { %529 = vmatpush3.bf16.msra.mxu0 %v528_v56 }
 0x120   :  { %v157_v50 = vpop.f32.mrb[0].mxu0 }
 0x121   :  { %v158_v51 = vadd.f32 %v367_v49, %v157_v50  ;;  %v411_v52 = vpop.f32.mrb[1].mxu0 }
 0x123   :  { %v161_v53 = vmax.f32 %v158_v51, 0.0 }
 0x125   :  { %445 = vmatmul.mubr.f32.vlgmr.msra.gmra.mrb[0].mxu1 %v161_v53 }
 0x1f8   :  { %v251_v58 = vpop.f32.mrb[0].mxu1 }
 0x1f9   :  { %v252_v59 = vadd.f32 %v369_v57, %v251_v58  ;;  %v446_v60 = vpop.f32.mrb[1].mxu1 }
 0x1fb   :  { %v255_v61 = vmax.f32 %v252_v59, 0.0 }
 0x1fd   :  { %480 = vmatmul.mubr.f32.vlgmr.msra.gmra.mrb[2].mxu0 %v255_v61 }
 0x2d0   :  { %v345_v63 = vpop.f32.mrb[2].mxu0 }
 0x2d1   :  { %v346_v0 = vadd.f32 %v370_v62, %v345_v63  ;;  %v481_v1 = vpop.f32.mrb[3].mxu0 }
 0x2d3   :  { %349 = vst [vmem:[#allocation10] sm:$0xff] %v346_v0 }
 0x2d4   :  { %639 = shalt.err (!%p636_p8)
}
 0x2d5   :  { %s640_s10 = scalar_lea.hbm %s803_s7, 128 }
 0x2d6   :  { %p641_p9 = scmp.ne.s32.totalorder %s803_s7, %s640_s10  ;;  %p644_p10 = scmp.lt.u32.totalorder %s640_s10, %s803_s7 }
 0x2d8   :  { %p646_p11 = pnand %p644_p10, %p641_p9 }
 0x2da   :  { %649 = shalt.err (!%p646_p11)
}
 0x2db   :  { %359 = dma.vmem_to_hbm [thread:$0]  %s357_s30, 128, %s803_s7, [#allocation4]  }
 0x2dc   :  { %656 = dma.done.wait [#allocation4], 128  }
 0x2dd   :  { %657 = vsyncadd [#allocation4], 4294967168 }
 0x2de   :  { %363 = vsyncpa [#allocation3], 1 }
 0x2df   :  { %364 = vsyncpa [#allocation6], 1 }
 0x2e0   :  { %365 = vsyncpa [#allocation9], 1 }
 0x2e1   :  { %366 = vsyncpa [#allocation4], 1 }

</bundles_post_ra>
